<compile_context>
chip_gen: v7x
topology: tpu7x:2x2x1
jax: 0.10.0
libtpu: 0.0.40
codegen_flags: <defaults>
</compile_context>

<pallas_src>
import math

import jax
import jax.numpy as jnp
from jax.experimental import pallas as pl
from jax.experimental.pallas import tpu as pltpu


# ----------------------------- Pallas kernel -----------------------------

def _dsw_kernel(x_ref, wblk_ref, b_ref, o_ref):
    # x_ref:    (Bt, ts_dim, ts_len)        pre-transposed batch tile (lane-dense)
    # wblk_ref: (ts_len, seg_num*d_model)   block-diagonal weight (VMEM-resident)
    # b_ref:    (1, seg_num*d_model)        bias tiled over segments
    # o_ref:    (Bt, ts_dim, seg_num*d_model)
    bt, ts_dim, ts_len = x_ref.shape
    # Merge the two leading dims so the MXU M dimension is Bt*ts_dim (>=128 at
    # the chosen tile size).  Contiguous merge of leading dims: free when
    # ts_dim is a multiple of 8 (sublane-aligned slabs).
    lhs = x_ref[...].reshape(bt * ts_dim, ts_len)
    # One lane-dense MXU matmul produces every segment's embedding for every
    # channel of every batch element in the tile (no in-kernel transpose).
    y = jnp.dot(lhs, wblk_ref[...], preferred_element_type=jnp.float32)
    y = y + b_ref[...]                                   # broadcast over rows
    o_ref[...] = y.reshape(bt, ts_dim, -1).astype(o_ref.dtype)


# ----------------------------- parameter prep -----------------------------

def prepare_dsw_params(w, b, seg_num, compute_dtype=jnp.float32):
    """One-time parameter transform (outside the hot path).

    w: (seg_len, d_model) == torch Linear.weight.T ;  b: (d_model,)
    Returns:
      wblk: (seg_num*seg_len, seg_num*d_model) block-diagonal weight
      bblk: (1, seg_num*d_model) bias tiled over segments (kept f32: added
            to the f32 accumulator)
    """
    # TODO(synk): for a compute-bound v5e deployment (ts_len >~ 500) feed the
    # plain (seg_len, d_model) weight with a seg_num grid axis instead of the
    # kron block-diagonal form to avoid the (seg_num-1)/seg_num zero-block FLOPs.
    w = w.astype(compute_dtype)
    wblk = jnp.kron(jnp.eye(seg_num, dtype=compute_dtype), w)
    bblk = jnp.tile(b.astype(jnp.float32), seg_num).reshape(1, -1)
    return wblk, bblk


# ----------------------------- tiling heuristic -----------------------------

def _pick_batch_tile(batch, ts_dim, ts_len, n_wide, itemsize, out_itemsize,
                     vmem_budget_bytes):
    """Pick Bt (a divisor of batch) per the review's sizing rules."""
    # (a) fill the MXU M dim (256 rows targets v6e/v7x, also fine on v5e)
    want_rows = pl.cdiv(256, ts_dim)
    # (b) ~2 MiB output block so the ~0.35us per-grid-step overhead amortizes
    out_row_bytes = ts_dim * n_wide * out_itemsize
    want_bytes = max(1, (2 << 20) // max(out_row_bytes, 1))
    bt = max(1, min(batch, max(want_rows, want_bytes)))

    # (c) fit weight + bias + double-buffered in/out blocks in the VMEM budget
    wblk_bytes = ts_len * n_wide * itemsize
    bias_bytes = n_wide * 4
    in_row_bytes = ts_dim * ts_len * itemsize

    def fits(b_):
        return (wblk_bytes + bias_bytes
                + 2 * b_ * (in_row_bytes + out_row_bytes)) <= vmem_budget_bytes

    while bt > 1 and not fits(bt):
        bt //= 2

    # make Bt a divisor of batch so every grid step is a full block
    while batch % bt:
        bt -= 1

    # (d) v7x: keep >= 2 balanced grid steps so both TensorCores get work,
    #     as long as the MXU M dim stays full (or the problem is tiny anyway).
    if batch > 1 and batch // bt < 2:
        half = max(1, bt // 2)
        while batch % half:
            half -= 1
        if half * ts_dim >= 128 or batch * ts_dim < 256:
            bt = half
    return bt


# ----------------------------- wrapper -----------------------------

def dsw_embedding(x, wblk, bblk, *, seg_len, d_model,
                  compute_dtype=jnp.float32,
                  vmem_budget_bytes=40 << 20,
                  vmem_limit_bytes=48 << 20):
    """x: (batch, ts_len, ts_dim) -> (batch, ts_dim, seg_num, d_model)."""
    batch, ts_len, ts_dim = x.shape
    assert ts_len % seg_len == 0, "ts_len must be divisible by seg_len"
    seg_num = ts_len // seg_len
    n_wide = seg_num * d_model
    assert wblk.shape == (ts_len, n_wide), (wblk.shape, (ts_len, n_wide))

    out_dtype = x.dtype
    if x.dtype != compute_dtype:        # avoid a redundant cast pass otherwise
        x = x.astype(compute_dtype)
    if wblk.dtype != compute_dtype:
        wblk = wblk.astype(compute_dtype)
    bblk = bblk.astype(jnp.float32)

    # One XLA transpose in the wrapper (instead of a lane-sparse XLU transpose
    # per kernel step): kernel input becomes lane-dense along ts_len.
    x_t = jnp.swapaxes(x, 1, 2)         # (batch, ts_dim, ts_len)

    itemsize = jnp.dtype(compute_dtype).itemsize
    out_itemsize = jnp.dtype(out_dtype).itemsize
    bt = _pick_batch_tile(batch, ts_dim, ts_len, n_wide, itemsize,
                          out_itemsize, vmem_budget_bytes)
    grid = (batch // bt,)

    cost = pl.CostEstimate(
        flops=2 * batch * ts_dim * ts_len * n_wide,
        transcendentals=0,
        bytes_accessed=(x_t.size * itemsize + wblk.size * itemsize
                        + bblk.size * 4
                        + batch * ts_dim * n_wide * out_itemsize),
    )

    out = pl.pallas_call(
        _dsw_kernel,
        grid=grid,
        in_specs=[
            pl.BlockSpec((bt, ts_dim, ts_len), lambda i: (i, 0, 0)),
            pl.BlockSpec((ts_len, n_wide), lambda i: (0, 0)),   # VMEM-resident
            pl.BlockSpec((1, n_wide), lambda i: (0, 0)),        # VMEM-resident
        ],
        out_specs=pl.BlockSpec((bt, ts_dim, n_wide), lambda i: (i, 0, 0)),
        out_shape=jax.ShapeDtypeStruct((batch, ts_dim, n_wide), out_dtype),
        compiler_params=pltpu.CompilerParams(
            dimension_semantics=("parallel",),
            vmem_limit_bytes=vmem_limit_bytes,
        ),
        cost_estimate=cost,
    )(x_t, wblk, bblk)

    # Contiguous split of the last dim: free metadata reshape, no data movement.
    return out.reshape(batch, ts_dim, seg_num, d_model)


# ----------------------------- pure-JAX reference -----------------------------

def _dsw_reference(x, w, b, seg_len):
    batch, ts_len, ts_dim = x.shape
    seg_num = ts_len // seg_len
    xs = x.reshape(batch, seg_num, seg_len, ts_dim)
    return jnp.einsum('bnsd,sm->bdnm', xs, w,
                      precision=jax.lax.Precision.HIGHEST) + b


# ----------------------------- driver -----------------------------

if __name__ == "__main__":
    BATCH, TS_DIM = 4, 8
    SEG_LEN, SEG_NUM = 8, 8
    TS_LEN = SEG_LEN * SEG_NUM            # 64
    D_MODEL = 128                         # lane-dense embedding width

    key = jax.random.PRNGKey(0)
    kx, kw, kb = jax.random.split(key, 3)
    x = jax.random.normal(kx, (BATCH, TS_LEN, TS_DIM), jnp.float32)
    bound = 1.0 / math.sqrt(SEG_LEN)      # torch nn.Linear default init range
    w = jax.random.uniform(kw, (SEG_LEN, D_MODEL), jnp.float32, -bound, bound)
    b = jax.random.uniform(kb, (D_MODEL,), jnp.float32, -bound, bound)

    # f32 end-to-end here for strict parity with the torch module; on v6e/v7x
    # pass compute_dtype=jnp.bfloat16 for the bf16-native MXU / halved traffic.
    wblk, bblk = prepare_dsw_params(w, b, SEG_NUM, compute_dtype=jnp.float32)
    out = dsw_embedding(x, wblk, bblk, seg_len=SEG_LEN, d_model=D_MODEL)
    jax.block_until_ready(out)

    assert out.shape == (BATCH, TS_DIM, SEG_NUM, D_MODEL), out.shape
    ref = _dsw_reference(x, w, b, SEG_LEN)
    max_err = float(jnp.max(jnp.abs(out - ref)))
    assert jnp.allclose(out, ref, atol=1e-2, rtol=1e-2), max_err
    print("KERNEL_OK")
</pallas_src>

<mosaic_0001>
module attributes {stable_mosaic.version = 11 : i64} {
  func.func @_dsw_kernel(%arg0: i32, %arg1: memref<2x8x64xf32, #tpu.memory_space<vmem>>, %arg2: memref<64x1024xf32, #tpu.memory_space<vmem>>, %arg3: memref<1x1024xf32, #tpu.memory_space<vmem>>, %arg4: memref<2x8x1024xf32, #tpu.memory_space<vmem>>) attributes {dimension_semantics = [#tpu.dimension_semantics<parallel>], iteration_bounds = array<i64: 2>, scalar_prefetch = 0 : i64, scratch_operands = 0 : i64, tpu.core_type = #tpu.core_type<tc>, window_params = [{transform_indices = @transform_0, window_bounds = array<i64: 2, 8, 64>}, {pipeline_mode = #tpu.pipeline_mode<synchronous>, transform_indices = @transform_1, window_bounds = array<i64: 64, 1024>}, {pipeline_mode = #tpu.pipeline_mode<synchronous>, transform_indices = @transform_2, window_bounds = array<i64: 1, 1024>}, {transform_indices = @transform_3, window_bounds = array<i64: 2, 8, 1024>}]} {
    %c0 = arith.constant 0 : index
    %c0_0 = arith.constant 0 : index
    %c0_1 = arith.constant 0 : index
    %0 = vector.load %arg1[%c0, %c0_0, %c0_1] : memref<2x8x64xf32, #tpu.memory_space<vmem>>, vector<2x8x64xf32>
    %1 = vector.shape_cast %0 : vector<2x8x64xf32> to vector<16x64xf32>
    %c0_2 = arith.constant 0 : index
    %c0_3 = arith.constant 0 : index
    %2 = vector.load %arg2[%c0_2, %c0_3] : memref<64x1024xf32, #tpu.memory_space<vmem>>, vector<64x1024xf32>
    %cst = arith.constant dense<0.000000e+00> : vector<16x1024xf32>
    %3 = tpu.matmul %1, %2, %cst {dimension_numbers = #tpu.dot_dimension_numbers<[1], [0], [0], [1], [0, 0, 1, 1], [], []>} : vector<16x64xf32>, vector<64x1024xf32>, vector<16x1024xf32> -> vector<16x1024xf32>
    %c0_4 = arith.constant 0 : index
    %c0_5 = arith.constant 0 : index
    %4 = vector.load %arg3[%c0_4, %c0_5] : memref<1x1024xf32, #tpu.memory_space<vmem>>, vector<1x1024xf32>
    %5 = vector.broadcast %4 : vector<1x1024xf32> to vector<16x1024xf32>
    %6 = arith.addf %3, %5 : vector<16x1024xf32>
    %7 = vector.shape_cast %6 : vector<16x1024xf32> to vector<2x8x1024xf32>
    %c0_6 = arith.constant 0 : index
    %c0_7 = arith.constant 0 : index
    %c0_8 = arith.constant 0 : index
    %8 = vector.load %arg4[%c0_6, %c0_7, %c0_8] : memref<2x8x1024xf32, #tpu.memory_space<vmem>>, vector<2x8x1024xf32>
    tpu.vector_store %arg4[%c0_6, %c0_7, %c0_8], %7 {strides = array<i32>} : memref<2x8x1024xf32, #tpu.memory_space<vmem>>, vector<2x8x1024xf32>,
    return
  }
  func.func @transform_0(%arg0: i32) -> (i32, i32, i32) {
    %c0_i32 = arith.constant 0 : i32
    %c0_i32_0 = arith.constant 0 : i32
    %c0_i32_1 = arith.constant 0 : i32
    return %arg0, %c0_i32, %c0_i32_0 : i32, i32, i32
  }
  func.func @transform_1(%arg0: i32) -> (i32, i32) {
    %c0_i32 = arith.constant 0 : i32
    %c0_i32_0 = arith.constant 0 : i32
    %c0_i32_1 = arith.constant 0 : i32
    return %c0_i32, %c0_i32_0 : i32, i32
  }
  func.func @transform_2(%arg0: i32) -> (i32, i32) {
    %c0_i32 = arith.constant 0 : i32
    %c0_i32_0 = arith.constant 0 : i32
    %c0_i32_1 = arith.constant 0 : i32
    return %c0_i32, %c0_i32_0 : i32, i32
  }
  func.func @transform_3(%arg0: i32) -> (i32, i32, i32) {
    %c0_i32 = arith.constant 0 : i32
    %c0_i32_0 = arith.constant 0 : i32
    %c0_i32_1 = arith.constant 0 : i32
    return %arg0, %c0_i32, %c0_i32_0 : i32, i32, i32
  }
}

</mosaic_0001>

<bundles_post_ra>
// kernel: tpu_custom_call.1
= control target key start
LH: loop header
LB: loop body
LE: loop exit
PB: predicated region body
PF: predicated region fallthrough
CT: control target
= control target key end

     0   :  { %8 = vsyncpa [#allocation3], 0  ;;  %s1401_s0 = inlined_call_operand.hbm [shape: f32[4,8,64], index: 0, kind: input, shape index: {}]   ;;  %s1402_s1 = inlined_call_operand.hbm [shape: f32[64,1024], index: 1, kind: input, shape index: {}]   ;;  %s1403_s2 = inlined_call_operand.hbm [shape: f32[1,1024], index: 2, kind: input, shape index: {}]   ;;  %s1404_s3 = inlined_call_operand.hbm [shape: f32[4,8,1024], index: 3, kind: output, shape index: {}]  }
   0x1   :  { %10 = vsyncpa [#allocation3 + $0x1], 0 }
   0x2   :  { %11 = vsyncpa [#allocation6], 0 }
   0x3   :  { %12 = vsyncpa [#allocation4], 0 }
   0x4   :  { %14 = vsyncpa [#allocation4 + $0x1], 0  ;;  %s1121_s12 = smov 0   ;;  %s1123_s13 = smov 0  }
   0x5   :  { %s1125_s14 = smov 0   ;;  %s1127_s15 = smov 0  }
   0x6 LB: > { %s1142_s16 = sadd.s32 4294967295, %s1088_s15   ;;  %s764_s17 = sadd.s32 4294967294, %s1088_s15   ;;  %s1088_s15 = sphi %s1127_s15, %s1424_s15   ;;  %s1084_s14 = sphi %s1125_s14, %s1423_s14   ;;  %s1080_s13 = sphi %s1123_s13, %s1422_s13   ;;  %s1076_s12 = sphi %s1121_s12, %s1421_s12  }
   0x7   : > { %p40_p0 = scmp.ne.s32.totalorder %s1080_s13, %s1076_s12  ;;  %p1405_p1 = scmp.eq.s32.totalorder %s1142_s16, 0 }
   0x8   : > { %p112_p3 = scmp.eq.s32.totalorder %s764_s17, 1  ;;  %p765_p5 = scmp.ge.s32.totalorder %s1088_s15, 1 }
   0x9   : > { %p1151_p4 = por %p1405_p1, %p40_p0  ;;  %p119_p7 = scmp.lt.s32.totalorder %s1088_s15, 3 }
   0xa   : > { %p1156_p6 = por %p112_p3, %p40_p0  ;;  %s1090_s21 = smov [#allocation5]  }
   0xb   : > { %s1408_s18 = scalar_select %p1151_p4, 1, 0 }
   0xc   : > { %s1409_s19 = scalar_select %p1156_p6, 1, 0 }
   0xd   : > { %p1161_p8 = pnand %p765_p5, %p119_p7  ;;  %s131_s22 = sshll.u32 %s1090_s21, 4  ;;  %s1165_s22 = int_to_ptr.vmem [resolvable:$true] %s131_s22 }
   0xe   : > { %s1091_s24 = smov [#allocation7]   ;;  %s932_s28 = scalar_lea.hbm %s1402_s1, 8192 }
   0xf   : > { %p870_p9 = pneg %p1161_p8  ;;  %s145_s25 = sshll.u32 %s1091_s24, 4  ;;  %s1176_s25 = int_to_ptr.vmem [resolvable:$true] %s145_s25 }
  0x10   : > { %p933_p12 = scmp.ne.s32.totalorder %s1402_s1, %s932_s28  ;;  %p939_p5 = scmp.lt.u32.totalorder %s932_s28, %s1402_s1 }
  0x11   : > { %p1172_p11 = pnand %p870_p9, %p1405_p1 }
  0x13   : > { %p934_p13 = pneg %p1172_p11 }
  0x15   : > { %p935_p0 = pnand %p934_p13, %p933_p12 }
  0x17   : > { %p936_p3 = pneg %p935_p0 }
  0x19   : > { %p941_p7 = pnand %p939_p5, %p936_p3 }
  0x1b   : > { %944 = shalt.err (!%p941_p7)
}
  0x1c   : > { %s945_s6 = scalar_lea.vmem %s1165_s22, 8192  ;;  %p953_p2 = scmp.lt.s32.totalorder %s1165_s22, %s1165_s22 }
  0x1d   : > { %p946_p9 = scmp.ne.s32.totalorder %s1165_s22, %s945_s6  ;;  %p954_p12 = scmp.lt.s32.totalorder %s945_s6, %s945_s6 }
  0x1f   : > { %p948_p10 = pnand %p946_p9, %p934_p13  ;;  %p955_p0 = por %p954_p12, %p953_p2 }
  0x21   : > { %p949_p1 = pneg %p948_p10 }
  0x23   : > { %p956_p6 = pnand %p955_p0, %p949_p1 }
  0x25   : > { %959 = shalt.err (!%p956_p6)
}
  0x26   : > { %s1092_s7 = smov 1024   ;;  %s1093_s8 = smov 64  }
  0x27   : > { %873 = dma.hbm_to_vmem [thread:$0]  (!%p1172_p11), %s1402_s1, 8192, %s1165_s22, [#allocation6], %s1092_s7, %s1092_s7, %s1093_s8  }
  0x28   : > { %s960_s21 = scalar_lea.hbm %s1403_s2, 128 }
  0x29   : > { %p961_p2 = scmp.ne.s32.totalorder %s1403_s2, %s960_s21  ;;  %p967_p10 = scmp.lt.u32.totalorder %s960_s21, %s1403_s2 }
  0x2b   : > { %p963_p1 = pnand %p961_p2, %p934_p13 }
  0x2d   : > { %p964_p6 = pneg %p963_p1 }
  0x2f   : > { %p969_p3 = pnand %p967_p10, %p964_p6 }
  0x31   : > { %972 = shalt.err (!%p969_p3)
}
  0x32   : > { %s973_s22 = scalar_lea.vmem %s1176_s25, 128  ;;  %p981_p12 = scmp.lt.s32.totalorder %s1176_s25, %s1176_s25 }
  0x33   : > { %p974_p5 = scmp.ne.s32.totalorder %s1176_s25, %s973_s22  ;;  %p982_p0 = scmp.lt.s32.totalorder %s973_s22, %s973_s22 }
  0x35   : > { %p976_p7 = pnand %p974_p5, %p934_p13  ;;  %p983_p2 = por %p982_p0, %p981_p12 }
  0x37   : > { %p977_p9 = pneg %p976_p7 }
  0x39   : > { %p984_p1 = pnand %p983_p2, %p977_p9 }
  0x3b   : > { %987 = shalt.err (!%p984_p1)
}
  0x3c   : > { %876 = dma.hbm_to_vmem [thread:$0]  (!%p1172_p11), %s1403_s2, 128, %s1176_s25, [#allocation6]  }
  0x3d   : > { %s1231_s4 = sadd.s32 1, %s1088_s15   ;;  %s27_s23 = sadd.s32 1, %s1084_s14 }
  0x3e   : > { %s24_s5 = ssub.s32 %s1088_s15, %s1231_s4  ;;  %p34_p13 = scmp.ne.s32.totalorder %s1084_s14, %s1080_s13 }
  0x3f   : > { %p25_p6 = scmp.eq.s32.totalorder %s24_s5, 0  ;;  %p35_p10 = scmp.eq.s32.totalorder %s1088_s15, 0 }
  0x40   : > { %p1412_p3 = scmp.eq.s32.totalorder %s1142_s16, 1  ;;  %p887_p7 = scmp.lt.s32.totalorder %s1088_s15, 2 }
  0x41   : > { %s1247_s7 = scalar_select %p25_p6, %s1084_s14, %s27_s23  }
  0x42   : > { %p1241_p5 = por %p1412_p3, %p34_p13  ;;  %p36_p9 = por %p35_p10, %p34_p13 }
  0x43   : > { %s156_s8 = sand.u32 1, %s1084_s14   ;;  %s791_s25 = sshll.u32 %s1088_s15, 8 }
  0x44   : > { %s1413_s6 = scalar_select %p1241_p5, 1, 0 }
  0x45   : > { %s769_s9 = sshll.u32 %s156_s8, 4  ;;  %s1254_s17 = scalar_lea.hbm %s1401_s0, %s791_s25 }
  0x46   : > { %s160_s21 = scalar_lea.vmem [#allocation2], %s769_s9  ;;  %p1258_p11 = pnand %p887_p7, %p36_p9 }
  0x47   : > { %s167_s24 = sshll.u32 %s160_s21, 4  ;;  %s1262_s27 = scalar_lea.sflag [#allocation3], %s156_s8  ;;  %s1256_s24 = int_to_ptr.vmem [resolvable:$true] %s167_s24 }
  0x48   : > { %s988_s28 = scalar_lea.hbm %s1254_s17, 256  ;;  %p990_p0 = pneg %p1258_p11 }
  0x49   : > { %p989_p12 = scmp.ne.s32.totalorder %s1254_s17, %s988_s28  ;;  %s993_s30 = scalar_lea.hbm %s1401_s0, 512 }
  0x4a   : > { %p994_p13 = scmp.lt.u32.totalorder %s1254_s17, %s1401_s0  ;;  %p995_p6 = scmp.lt.u32.totalorder %s993_s30, %s988_s28 }
  0x4b   : > { %p991_p2 = pnand %p990_p0, %p989_p12  ;;  %p997_p3 = scmp.lt.u32.totalorder %s988_s28, %s1254_s17 }
  0x4c   : > { %p996_p10 = por %p995_p6, %p994_p13 }
  0x4d   : > { %p992_p1 = pneg %p991_p2 }
  0x4e   : > { %p998_p7 = por %p997_p3, %p996_p10 }
  0x50   : > { %p999_p9 = pnand %p998_p7, %p992_p1 }
  0x52   : > { %1002 = shalt.err (!%p999_p9)
}
  0x53   : > { %s1003_s8 = scalar_lea.vmem %s1256_s24, 256  ;;  %s1094_s9 = smov [#allocation2]  }
  0x54   : > { %p1004_p12 = scmp.ne.s32.totalorder %s1256_s24, %s1003_s8  ;;  %s1008_s25 = sshll.u32 %s1094_s9, 4  ;;  %s1009_s25 = int_to_ptr.vmem [resolvable:$false] %s1008_s25 }
  0x55   : > { %s1010_s10 = scalar_lea.vmem %s1009_s25, 512  ;;  %p1011_p4 = scmp.lt.s32.totalorder %s1256_s24, %s1009_s25 }
  0x56   : > { %p1006_p2 = pnand %p1004_p12, %p990_p0  ;;  %p1012_p13 = scmp.lt.s32.totalorder %s1010_s10, %s1003_s8 }
  0x58   : > { %p1007_p5 = pneg %p1006_p2  ;;  %p1013_p6 = por %p1012_p13, %p1011_p4 }
  0x5a   : > { %p1014_p10 = pnand %p1013_p6, %p1007_p5 }
  0x5c   : > { %1017 = shalt.err (!%p1014_p10)
}
  0x5d   : > { %s1095_s11 = smov 128   ;;  %s1096_s21 = smov 8  }
  0x5e   : > { %880 = dma.hbm_to_vmem [thread:$0]  (!%p1258_p11), %s1254_s17, 256, %s1256_s24, %s1262_s27, %s1095_s11, %s1095_s11, %s1096_s21  }
  0x5f   : > { %179 = sbr.rel (%p1161_p8) target bundleno = 377 (0x179), region = 32  ;;  %s1293_s28 = sand.u32 (!%p1161_p8), 1, %s1080_s13  }
  0x60   : > { %s773_s22 = sshll.u32 (!%p1161_p8), %s1293_s28, 4  ;;  %s182_s29 = scalar_lea.sflag (!%p1161_p8), [#allocation3], %s1293_s28 }
  0x61   : > { %s1297_s30 = scalar_lea.vmem (!%p1161_p8), [#allocation2], %s773_s22  ;;  %p1415_p4 = scmp.ne.s32.totalorder (!%p1161_p8), %s1408_s18, 0 }
  0x66   : > { %1063 = dma.done.wait (%p1415_p4), %s182_s29, 256  }
  0x67   : > { %1065 = vsyncadd (%p1415_p4), %s182_s29, 4294967040  ;;  %p1416_p5 = scmp.eq.s32.totalorder %s1142_s16, 0 }
  0x69   : > { %1067 = dma.done.wait (%p1416_p5), [#allocation6], 8320   ;;  %p1417_p8 = pmov %p1416_p5 }
  0x6a   : > { %v1097_v0 = vmov 0.0   ;;  %v221_v1 = vld [vmem:[#allocation5 + $0x8] sm:$0xff]  ;;  %v223_v3 = vld [vmem:[#allocation5 + $0x18] sm:$0xff]  ;;  %v220_v6 = vld [vmem:[#allocation5] sm:$0xff]  ;;  %vm326_vm0 = vcmask 523264   ;;  %s776_s18 = sshll.u32 %s1293_s28, 7 }
  0x6b   : > { %1069 = vsyncadd (%p1417_p8), [#allocation6], 4294958976  ;;  %397 = vmatprep.mubr.f32.mxu0 %v1097_v0  ;;  %474 = vmatprep.mubr.f32.mxu1 %v1097_v0  ;;  %v229_v2 = vld [vmem:[#allocation5 + $0x48] sm:$0xff]  ;;  %v231_v5 = vld [vmem:[#allocation5 + $0x58] sm:$0xff]  ;;  %s1332_s20 = scalar_lea.vmem [#allocation8], %s776_s18  ;;  %s793_s17 = sshll.u32 %s1142_s16, 11 }
  0x6c   : > { %v794_v4 = vpack.c.bf16 %v229_v2, %v221_v1  ;;  %v228_v7 = vld [vmem:[#allocation5 + $0x40] sm:$0xff]  ;;  %v810_v8 = vpack.c.bf16 %v231_v5, %v223_v3  ;;  %v222_v10 = vld [vmem:[#allocation5 + $0x10] sm:$0xff]  ;;  %v237_v12 = vld [vmem:[#allocation5 + $0x88] sm:$0xff]  ;;  %s672_s24 = sshll.u32 %s1332_s20, 4  ;;  %s1351_s16 = scalar_lea.hbm %s1404_s3, %s793_s17  ;;  %s1353_s24 = int_to_ptr.vmem [resolvable:$true] %s672_s24 }
  0x6d   : > { %v796_v9 = vpack.c.bf16 %v228_v7, %v220_v6  ;;  %v230_v11 = vld [vmem:[#allocation5 + $0x50] sm:$0xff]  ;;  %v245_v14 = vld [vmem:[#allocation5 + $0xc8] sm:$0xff]  ;;  %v239_v15 = vld [vmem:[#allocation5 + $0x98] sm:$0xff]  ;;  %s658_s23 = scalar_lea.sflag [#allocation4], %s1293_s28  ;;  %s1018_s5 = scalar_lea.vmem %s1353_s24, 2048 }
  0x6e   : > { %795 = vmatprep.subr.bf16.mxu0 %v794_v4  ;;  %v812_v13 = vpack.c.bf16 %v230_v11, %v222_v10  ;;  %v247_v16 = vld [vmem:[#allocation5 + $0xd8] sm:$0xff]  ;;  %811 = vmatprep.subr.bf16.mxu1 %v810_v8  ;;  %v798_v17 = vpack.c.bf16 %v245_v14, %v237_v12  ;;  %v236_v19 = vld [vmem:[#allocation5 + $0x80] sm:$0xff]  ;;  %v238_v21 = vld [vmem:[#allocation5 + $0x90] sm:$0xff]  ;;  %p1019_p11 = scmp.ne.s32.totalorder %s1353_s24, %s1018_s5  ;;  %p1418_p0 = scmp.ne.s32.totalorder %s1413_s6, 0 }
  0x6f   : > { %797 = vmatpush1.bf16.msra.mxu0 %v796_v9  ;;  %v814_v18 = vpack.c.bf16 %v247_v16, %v239_v15  ;;  %v244_v20 = vld [vmem:[#allocation5 + $0xc0] sm:$0xff]  ;;  %v246_v23 = vld [vmem:[#allocation5 + $0xd0] sm:$0xff]  ;;  %v253_v24 = vld [vmem:[#allocation5 + $0x108] sm:$0xff]  ;;  %s1098_s8 = smov [#allocation8]  }
  0x70   : > { %813 = vmatpush1.bf16.msra.mxu1 %v812_v13  ;;  %v800_v22 = vpack.c.bf16 %v244_v20, %v236_v19  ;;  %v261_v25 = vld [vmem:[#allocation5 + $0x148] sm:$0xff]  ;;  %799 = vmatprep.subr.bf16.mxu0 %v798_v17  ;;  %v816_v26 = vpack.c.bf16 %v246_v23, %v238_v21  ;;  %v255_v28 = vld [vmem:[#allocation5 + $0x118] sm:$0xff]  ;;  %v252_v30 = vld [vmem:[#allocation5 + $0x100] sm:$0xff]  ;;  %p1020_p1 = pnand %p1019_p11, %p1418_p0  ;;  %s1022_s9 = sshll.u32 %s1098_s8, 4  ;;  %s1023_s9 = int_to_ptr.vmem [resolvable:$false] %s1022_s9 }
  0x71   : > { %815 = vmatprep.subr.bf16.mxu1 %v814_v18  ;;  %v802_v27 = vpack.c.bf16 %v261_v25, %v253_v24  ;;  %v263_v29 = vld [vmem:[#allocation5 + $0x158] sm:$0xff]  ;;  %v260_v32 = vld [vmem:[#allocation5 + $0x140] sm:$0xff]  ;;  %v254_v33 = vld [vmem:[#allocation5 + $0x110] sm:$0xff]  ;;  %s1024_s25 = scalar_lea.vmem %s1023_s9, 4096  ;;  %p1025_p7 = scmp.lt.s32.totalorder %s1353_s24, %s1023_s9 }
  0x72   : > { %v818_v31 = vpack.c.bf16 %v263_v29, %v255_v28  ;;  %v262_v34 = vld [vmem:[#allocation5 + $0x150] sm:$0xff]  ;;  %v804_v35 = vpack.c.bf16 %v260_v32, %v252_v30  ;;  %v269_v36 = vld [vmem:[#allocation5 + $0x188] sm:$0xff]  ;;  %v271_v38 = vld [vmem:[#allocation5 + $0x198] sm:$0xff]  ;;  %p1021_p3 = pneg %p1020_p1  ;;  %p1026_p9 = scmp.lt.s32.totalorder %s1024_s25, %s1018_s5 }
  0x73   : > { %801 = vmatpush1.bf16.msra.mxu0 %v800_v22  ;;  %v277_v37 = vld [vmem:[#allocation5 + $0x1c8] sm:$0xff]  ;;  %v820_v39 = vpack.c.bf16 %v262_v34, %v254_v33  ;;  %v279_v41 = vld [vmem:[#allocation5 + $0x1d8] sm:$0xff]  ;;  %v268_v42 = vld [vmem:[#allocation5 + $0x180] sm:$0xff] }
  0x74   : > { %817 = vmatpush1.bf16.msra.mxu1 %v816_v26  ;;  %803 = vmatprep.subr.bf16.mxu0 %v802_v27  ;;  %v806_v40 = vpack.c.bf16 %v277_v37, %v269_v36  ;;  %v276_v43 = vld [vmem:[#allocation5 + $0x1c0] sm:$0xff]  ;;  %v822_v44 = vpack.c.bf16 %v279_v41, %v271_v38  ;;  %v270_v45 = vld [vmem:[#allocation5 + $0x190] sm:$0xff]  ;;  %v225_v47 = vld [vmem:[#allocation5 + $0x28] sm:$0xff]  ;;  %v286_v36 = vlaneseq  ;;  %p1027_p12 = por %p1026_p9, %p1025_p7 }
  0x75   : > { %819 = vmatprep.subr.bf16.mxu1 %v818_v31  ;;  %v278_v46 = vld [vmem:[#allocation5 + $0x1d0] sm:$0xff]  ;;  %v233_v48 = vld [vmem:[#allocation5 + $0x68] sm:$0xff]  ;;  %v227_v49 = vld [vmem:[#allocation5 + $0x38] sm:$0xff]  ;;  %v808_v50 = vpack.c.bf16 %v276_v43, %v268_v42 }
  0x76   : > { %v235_v51 = vld [vmem:[#allocation5 + $0x78] sm:$0xff]  ;;  %v824_v52 = vpack.c.bf16 %v278_v46, %v270_v45  ;;  %v826_v53 = vpack.c.bf16 %v233_v48, %v225_v47  ;;  %v224_v54 = vld [vmem:[#allocation5 + $0x20] sm:$0xff]  ;;  %v226_v56 = vld [vmem:[#allocation5 + $0x30] sm:$0xff]  ;;  %v287_v37 = vshrl.u32 %v286_v36, 7  ;;  %p1028_p2 = pnand %p1027_p12, %p1021_p3 }
  0x77   : > { %805 = vmatpush1.bf16.msra.mxu0 %v804_v35  ;;  %v232_v55 = vld [vmem:[#allocation5 + $0x60] sm:$0xff]  ;;  %v842_v57 = vpack.c.bf16 %v235_v51, %v227_v49  ;;  %v234_v58 = vld [vmem:[#allocation5 + $0x70] sm:$0xff]  ;;  %v241_v59 = vld [vmem:[#allocation5 + $0xa8] sm:$0xff] }
  0x78   : > { %821 = vmatpush1.bf16.msra.mxu1 %v820_v39  ;;  %807 = vmatprep.subr.bf16.mxu0 %v806_v40  ;;  %v249_v60 = vld [vmem:[#allocation5 + $0xe8] sm:$0xff]  ;;  %v243_v61 = vld [vmem:[#allocation5 + $0xb8] sm:$0xff]  ;;  %v1310_v63 = vld [vmem:[%s1297_s30] sm:$0xff]  ;;  %v828_v1 = vpack.c.bf16 %v232_v55, %v224_v54  ;;  %v844_v2 = vpack.c.bf16 %v234_v58, %v226_v56  ;;  %v288_v38 = vsub.s32 0, %v287_v37  ;;  %v296_v40 = vsub.s32 2, %v287_v37 }
  0x79   : > { %823 = vmatprep.subr.bf16.mxu1 %v822_v44  ;;  %v251_v62 = vld [vmem:[#allocation5 + $0xf8] sm:$0xff]  ;;  %v830_v3 = vpack.c.bf16 %v249_v60, %v241_v59  ;;  %v240_v4 = vld [vmem:[#allocation5 + $0xa0] sm:$0xff]  ;;  %v242_v6 = vld [vmem:[#allocation5 + $0xb0] sm:$0xff]  ;;  %v292_v41 = vsub.s32 1, %v287_v37  ;;  %v300_v42 = vsub.s32 3, %v287_v37 }
  0x7a   : > { %v248_v5 = vld [vmem:[#allocation5 + $0xe0] sm:$0xff]  ;;  %v846_v7 = vpack.c.bf16 %v251_v62, %v243_v61  ;;  %v250_v8 = vld [vmem:[#allocation5 + $0xf0] sm:$0xff]  ;;  %v257_v9 = vld [vmem:[#allocation5 + $0x128] sm:$0xff]  ;;  %v304_v62 = vsub.s32 4, %v287_v37 }
  0x7b   : > { %809 = vmatpush1.bf16.msra.mxu0 %v808_v50  ;;  %v265_v10 = vld [vmem:[#allocation5 + $0x168] sm:$0xff]  ;;  %v259_v11 = vld [vmem:[#allocation5 + $0x138] sm:$0xff]  ;;  %v832_v13 = vpack.c.bf16 %v248_v5, %v240_v4  ;;  %v848_v15 = vpack.c.bf16 %v250_v8, %v242_v6  ;;  %v256_v17 = vld [vmem:[#allocation5 + $0x120] sm:$0xff] }
  0x7c   : > { %825 = vmatpush1.bf16.msra.mxu1 %v824_v52  ;;  %827 = vmatprep.subr.bf16.mxu0 %v826_v53  ;;  %v267_v12 = vld [vmem:[#allocation5 + $0x178] sm:$0xff]  ;;  %v834_v16 = vpack.c.bf16 %v265_v10, %v257_v9  ;;  %v264_v18 = vld [vmem:[#allocation5 + $0x160] sm:$0xff]  ;;  %v258_v19 = vld [vmem:[#allocation5 + $0x130] sm:$0xff] }
  0x7d   : > { %843 = vmatprep.subr.bf16.mxu1 %v842_v57  ;;  %v219_v14 = vld [vmem:[%s1297_s30 + $0x8] sm:$0xff]  ;;  %v850_v20 = vpack.c.bf16 %v267_v12, %v259_v11  ;;  %v266_v21 = vld [vmem:[#allocation5 + $0x170] sm:$0xff]  ;;  %v836_v26 = vpack.c.bf16 %v264_v18, %v256_v17  ;;  %v272_v29 = vld [vmem:[#allocation5 + $0x1a0] sm:$0xff] }
  0x7e   : > { %777 = vmatmul.mubr.msk.f32.vlgmr.msra.gmra.mrb[0].mxu0 %vm326_vm0, %v1310_v63  ;;  %v273_v22 = vld [vmem:[#allocation5 + $0x1a8] sm:$0xff]  ;;  %v275_v24 = vld [vmem:[#allocation5 + $0x1b8] sm:$0xff]  ;;  %v852_v27 = vpack.c.bf16 %v266_v21, %v258_v19  ;;  %v280_v30 = vld [vmem:[#allocation5 + $0x1e0] sm:$0xff] }
  0x7f   : > { %779 = vmatmul.mubr.msk.f32.vlgmr.msra.gmra.mrb[0].mxu1 %vm326_vm0, %v1310_v63  ;;  %829 = vmatpush1.bf16.msra.mxu0 %v828_v1  ;;  %v281_v23 = vld [vmem:[#allocation5 + $0x1e8] sm:$0xff]  ;;  %v283_v25 = vld [vmem:[#allocation5 + $0x1f8] sm:$0xff]  ;;  %v274_v32 = vld [vmem:[#allocation5 + $0x1b0] sm:$0xff]  ;;  %v840_v34 = vpack.c.bf16 %v280_v30, %v272_v29  ;;  %v308_v1 = vsub.s32 5, %v287_v37 }
  0x80   : > { %845 = vmatpush1.bf16.msra.mxu1 %v844_v2  ;;  %831 = vmatprep.subr.bf16.mxu0 %v830_v3  ;;  %v838_v28 = vpack.c.bf16 %v281_v23, %v273_v22  ;;  %v854_v31 = vpack.c.bf16 %v283_v25, %v275_v24  ;;  %v282_v33 = vld [vmem:[#allocation5 + $0x1f0] sm:$0xff]  ;;  %v284_v39 = vld [vmem:[#allocation7] sm:$0xff]  ;;  %v316_v2 = vsub.s32 7, %v287_v37 }
  0x81   : > { %847 = vmatprep.subr.bf16.mxu1 %v846_v7  ;;  %403 = vmatprep.mubr.f32.mxu0 %v1097_v0  ;;  %v856_v35 = vpack.c.bf16 %v282_v33, %v274_v32  ;;  %v289_v43 = vrot.slane %v284_v39, %v288_v38  ;;  %v297_v44 = vrot.slane %v284_v39, %v296_v40 }
  0x82   : > { %480 = vmatprep.mubr.f32.mxu1 %v1097_v0  ;;  %778 = vmatmul.mubr.msk.f32.gmra.mrb[2].mxu0 %vm326_vm0, %v219_v14  ;;  %v293_v45 = vrot.slane %v284_v39, %v292_v41  ;;  %v301_v46 = vrot.slane %v284_v39, %v300_v42  ;;  %v305_v3 = vrot.slane %v284_v39, %v304_v62 }
  0x83   : > { %833 = vmatpush1.bf16.msra.mxu0 %v832_v13  ;;  %780 = vmatmul.mubr.msk.f32.gmra.mrb[2].mxu1 %vm326_vm0, %v219_v14  ;;  %v309_v5 = vrot.slane %v284_v39, %v308_v1  ;;  %v317_v6 = vrot.slane %v284_v39, %v316_v2 }
  0x84   : > { %849 = vmatpush1.bf16.msra.mxu1 %v848_v15  ;;  %835 = vmatprep.subr.bf16.mxu0 %v834_v16 }
  0x85   : > { %851 = vmatprep.subr.bf16.mxu1 %v850_v20  ;;  %551 = vmatprep.mubr.f32.mxu0 %v1097_v0 }
  0x86   : > { %628 = vmatprep.mubr.f32.mxu1 %v1097_v0 }
  0x87   : > { %837 = vmatpush1.bf16.msra.mxu0 %v836_v26 }
  0x88   : > { %853 = vmatpush1.bf16.msra.mxu1 %v852_v27  ;;  %839 = vmatprep.subr.bf16.mxu0 %v838_v28 }
  0x89   : > { %855 = vmatprep.subr.bf16.mxu1 %v854_v31 }
  0x8b   : > { %841 = vmatpush1.bf16.msra.mxu0 %v840_v34 }
  0x8c   : > { %857 = vmatpush1.bf16.msra.mxu1 %v856_v35 }
  0x8e   : > { %781 = vmatmul.mubr.msk.f32.vlgmr.msra.gmra.mrb[4].mxu0 %vm326_vm0, %v1310_v63 }
  0x8f   : > { %783 = vmatmul.mubr.msk.f32.vlgmr.msra.gmra.mrb[4].mxu1 %vm326_vm0, %v1310_v63  ;;  %557 = vmatprep.mubr.f32.mxu0 %v1097_v0  ;;  %v312_v63 = vsub.s32 6, %v287_v37 }
  0x90   : > { %634 = vmatprep.mubr.f32.mxu1 %v1097_v0 }
  0x91   : > { %v313_v4 = vrot.slane %v284_v39, %v312_v63 }
  0x92   : > { %782 = vmatmul.mubr.msk.f32.gmra.mrb[6].mxu0 %vm326_vm0, %v219_v14 }
  0x93   : > { %784 = vmatmul.mubr.msk.f32.gmra.mrb[6].mxu1 %vm326_vm0, %v219_v14 }
 0x151   : > { %v399_v47 = vpop.f32.mrb[0].mxu0 }
 0x152   : > { %v400_v48 = vadd.f32 %v399_v47, %v289_v43  ;;  %v476_v49 = vpop.f32.mrb[0].mxu1  ;;  %v401_v0 = vpop.f32.mrb[1].mxu0 }
 0x153   : > { %v477_v50 = vadd.f32 %v476_v49, %v297_v44  ;;  %v402_v51 = vadd.f32 %v401_v0, %v293_v45  ;;  %v478_v52 = vpop.f32.mrb[1].mxu1 }
 0x154   : > { %641 = vst [vmem:[%s1332_s20] sm:$0xff] %v400_v48  ;;  %v479_v53 = vadd.f32 %v478_v52, %v301_v46 }
 0x155   : > { %643 = vst [vmem:[%s1332_s20 + $0x10] sm:$0xff] %v477_v50  ;;  %642 = vst [vmem:[%s1332_s20 + $0x8] sm:$0xff] %v402_v51  ;;  %v405_v54 = vpop.f32.mrb[2].mxu0 }
 0x156   : > { %644 = vst [vmem:[%s1332_s20 + $0x18] sm:$0xff] %v479_v53  ;;  %v406_v55 = vadd.f32 %v405_v54, %v289_v43  ;;  %v482_v56 = vpop.f32.mrb[2].mxu1  ;;  %v407_v57 = vpop.f32.mrb[3].mxu0 }
 0x157   : > { %v483_v58 = vadd.f32 %v482_v56, %v297_v44  ;;  %v408_v59 = vadd.f32 %v407_v57, %v293_v45  ;;  %v484_v60 = vpop.f32.mrb[3].mxu1 }
 0x158   : > { %649 = vst [vmem:[%s1332_s20 + $0x40] sm:$0xff] %v406_v55  ;;  %v485_v61 = vadd.f32 %v484_v60, %v301_v46 }
 0x159   : > { %651 = vst [vmem:[%s1332_s20 + $0x50] sm:$0xff] %v483_v58  ;;  %650 = vst [vmem:[%s1332_s20 + $0x48] sm:$0xff] %v408_v59 }
 0x15a   : > { %652 = vst [vmem:[%s1332_s20 + $0x58] sm:$0xff] %v485_v61 }
 0x161   : > { %v553_v7 = vpop.f32.mrb[4].mxu0 }
 0x162   : > { %v554_v8 = vadd.f32 %v553_v7, %v305_v3  ;;  %v630_v9 = vpop.f32.mrb[4].mxu1  ;;  %v555_v10 = vpop.f32.mrb[5].mxu0 }
 0x163   : > { %v631_v11 = vadd.f32 %v630_v9, %v313_v4  ;;  %v556_v12 = vadd.f32 %v555_v10, %v309_v5  ;;  %v632_v13 = vpop.f32.mrb[5].mxu1 }
 0x164   : > { %645 = vst [vmem:[%s1332_s20 + $0x20] sm:$0xff] %v554_v8  ;;  %v633_v14 = vadd.f32 %v632_v13, %v317_v6 }
 0x165   : > { %647 = vst [vmem:[%s1332_s20 + $0x30] sm:$0xff] %v631_v11  ;;  %646 = vst [vmem:[%s1332_s20 + $0x28] sm:$0xff] %v556_v12  ;;  %v559_v15 = vpop.f32.mrb[6].mxu0 }
 0x166   : > { %648 = vst [vmem:[%s1332_s20 + $0x38] sm:$0xff] %v633_v14  ;;  %v560_v16 = vadd.f32 %v559_v15, %v305_v3  ;;  %v636_v17 = vpop.f32.mrb[6].mxu1  ;;  %v561_v18 = vpop.f32.mrb[7].mxu0 }
 0x167   : > { %v637_v19 = vadd.f32 %v636_v17, %v313_v4  ;;  %v562_v20 = vadd.f32 %v561_v18, %v309_v5  ;;  %v638_v21 = vpop.f32.mrb[7].mxu1 }
 0x168   : > { %653 = vst [vmem:[%s1332_s20 + $0x60] sm:$0xff] %v560_v16  ;;  %v639_v22 = vadd.f32 %v638_v21, %v317_v6 }
 0x169   : > { %655 = vst [vmem:[%s1332_s20 + $0x70] sm:$0xff] %v637_v19  ;;  %654 = vst [vmem:[%s1332_s20 + $0x68] sm:$0xff] %v562_v20 }
 0x16a   : > { %656 = vst [vmem:[%s1332_s20 + $0x78] sm:$0xff] %v639_v22 }
 0x16b   : > { %1031 = shalt.err (!%p1028_p2)
}
 0x16c   : > { %s1032_s10 = scalar_lea.hbm %s1351_s16, 2048  ;;  %s1036_s22 = scalar_lea.hbm %s1404_s3, 4096 }
 0x16d   : > { %p1033_p13 = scmp.ne.s32.totalorder %s1351_s16, %s1032_s10  ;;  %p1037_p4 = scmp.lt.u32.totalorder %s1351_s16, %s1404_s3 }
 0x16e   : > { %p1038_p5 = scmp.lt.u32.totalorder %s1036_s22, %s1032_s10  ;;  %p1040_p11 = scmp.lt.u32.totalorder %s1032_s10, %s1351_s16 }
 0x16f   : > { %p1034_p6 = pnand %p1033_p13, %p1418_p0 }
 0x170   : > { %p1039_p8 = por %p1038_p5, %p1037_p4 }
 0x171   : > { %p1035_p10 = pneg %p1034_p6 }
 0x172   : > { %p1041_p1 = por %p1040_p11, %p1039_p8 }
 0x174   : > { %p1042_p3 = pnand %p1041_p1, %p1035_p10 }
 0x176   : > { %1045 = shalt.err (!%p1042_p3)
}
 0x177   : > { %s1099_s18 = smov 1024   ;;  %s1100_s20 = smov 64  }
 0x178   : > { %868 = dma.vmem_to_hbm [thread:$0]  (%p1418_p0), %s1353_s24, 2048, %s1351_s16, %s658_s23, %s1099_s18, %s1099_s18, %s1100_s20  }
 0x179 PF: > { %s687_s17 = sand.u32 1, %s1076_s12   ;;  %p1419_p7 = scmp.ne.s32.totalorder %s1409_s19, 0 }
 0x17a   : > { %p1420_p9 = scmp.ge.s32.totalorder %s1088_s15, 2  ;;  %s688_s26 = scalar_lea.sflag [#allocation4], %s687_s17 }
 0x17c   : > { %p882_p12 = pnand %p1420_p9, %p1419_p7 }
 0x17e   : > { %1071 = dma.done.wait (!%p882_p12), %s688_s26, 2048  }
 0x17f   : > { %1073 = vsyncadd (!%p882_p12), %s688_s26, 4294965248  ;;  %p17_p2 = scmp.ge.s32.totalorder %s1231_s4, 4   ;;  %s1421_s12 = smov %s1080_s13 }
 0x180   : > { %s1422_s13 = smov %s1084_s14  ;;  %s1423_s14 = smov %s1247_s7 }
 0x181   : > { %s1424_s15 = smov %s1231_s4  ;;  %19 = sbr.rel (!%p17_p2) target bundleno = 6 (0x6), region = 85 }
 0x188   :  { %693 = vsyncpa [#allocation3], 1 }
 0x189   :  { %695 = vsyncpa [#allocation3 + $0x1], 1 }
 0x18a   :  { %696 = vsyncpa [#allocation6], 1 }
 0x18b   :  { %697 = vsyncpa [#allocation4], 1 }
 0x18c   :  { %699 = vsyncpa [#allocation4 + $0x1], 1 }

</bundles_post_ra>
